<compile_context>
chip_gen: v6e
topology: v6e:2x2x1
jax: 0.10.0
libtpu: 0.0.40
codegen_flags: <defaults>
</compile_context>

<pallas_src>
import functools

import jax
import jax.numpy as jnp
from jax.experimental import pallas as pl
from jax.experimental.pallas import tpu as pltpu

LANE = 128


# ----------------------------------------------------------------------------- utilities
def _vmem_capacity_bytes():
    """Per-core VMEM capacity; conservative fallback (v7x = 64 MiB) if query fails."""
    try:
        return int(pltpu.get_tpu_info().vmem_capacity_bytes)
    except Exception:
        return 64 << 20


def _choose_b_tile(B, row_bytes, target_bytes, max_rows_cap=32):
    """Pick a divisor of B for the batch tile.

    Preference: block bytes within budget (and <= max_rows_cap manual DMAs per step)
    > even grid-step count >= 4 (keeps both v7x TensorCores busy, no tail step)
    > larger tile (amortizes ~0.35 us per-grid-step overhead).
    """
    max_rows = int(max(1, min(target_bytes // max(row_bytes, 1), max_rows_cap)))
    divisors = [d for d in range(1, B + 1) if B % d == 0]

    def score(d):
        steps = B // d
        return (d <= max_rows, steps >= 4 and steps % 2 == 0, d)

    return max(divisors, key=score)


# ------------------------------------------------------------------------------- kernels
def _mixup_rowgather_kernel(permut_ref, lamb_ref, x_ref, xp_ref, o_ref):
    """Per-row grid: the permuted row arrives through an auto-pipelined BlockSpec whose
    index_map reads the scalar-prefetched permutation table -> fully hidden gather."""
    del permut_ref  # only used inside the index_maps
    lam = lamb_ref[0]
    o_ref[...] = (lam * x_ref[...] + (1.0 - lam) * xp_ref[...]).astype(o_ref.dtype)


def _mixup_tiled_kernel(b_tile, permut_ref, lamb_ref, x_ref, x_hbm, o_ref, xp_buf, sems):
    """Multi-row block with the permuted-row gather double-buffered across grid steps.

    permut_ref : SMEM (B,) int32        scalar-prefetched permutation table
    lamb_ref   : SMEM (1,) float32      mixup coefficient
    x_ref      : VMEM (b_tile, R, 128)  identity rows (auto-pipelined)
    x_hbm      : HBM  (B, R, 128)       whole x, source of the permuted gather
    o_ref      : VMEM (b_tile, R, 128)  output rows (auto-pipelined)
    xp_buf     : VMEM (2, b_tile, R, 128) double-buffered gather destination
    sems       : DMA semaphores (2, b_tile)
    """
    i = pl.program_id(0)
    n = pl.num_programs(0)
    slot = i & 1          # buffer half holding THIS step's gathered rows
    nslot = 1 - slot      # buffer half to prefetch NEXT step's rows into
    b0 = i * b_tile

    # All scalar SMEM reads happen before any DMA wait (.wait() breaks sst->sld fwd).
    lam = lamb_ref[0]
    cur_src = [permut_ref[b0 + r] for r in range(b_tile)]

    # Prime the pipeline: only the very first step issues its own gathers.
    @pl.when(i == 0)
    def _prime():
        for r in range(b_tile):  # static unroll, b_tile <= 32
            pltpu.make_async_copy(
                x_hbm.at[cur_src[r]], xp_buf.at[slot, r], sems.at[slot, r]
            ).start()

    # Prefetch the next step's permuted rows into the other buffer half so the gather
    # overlaps this step's blend and the auto-pipeline's identity/output DMAs.
    @pl.when(i + 1 < n)
    def _prefetch_next():
        nb0 = (i + 1) * b_tile
        for r in range(b_tile):
            nsrc = permut_ref[nb0 + r]
            pltpu.make_async_copy(
                x_hbm.at[nsrc], xp_buf.at[nslot, r], sems.at[nslot, r]
            ).start()

    # Wait on this step's gathers (issued at step i-1, or just above when i == 0).
    # Descriptors are rebuilt with the true source row so they match the start() exactly.
    for r in range(b_tile):
        pltpu.make_async_copy(
            x_hbm.at[cur_src[r]], xp_buf.at[slot, r], sems.at[slot, r]
        ).wait()

    mixed = lam * x_ref[...] + (1.0 - lam) * xp_buf[slot]
    o_ref[...] = mixed.astype(o_ref.dtype)


# ------------------------------------------------------------------------------- wrapper
def mixup_apply(x, lamb, permut, *, force_row_gather=False, interpret=False):
    """lamb * x + (1 - lamb) * x[permut]  (Mixup.forward, train/enabled path)."""
    B = x.shape[0]
    F = 1
    for s in x.shape[1:]:
        F *= s

    # Lane-dense layout: flatten features, pad to a multiple of 128 and view each row as
    # an (R, 128) slab so every block's trailing dims are full-extent (no masked stores).
    x2d = x.reshape(B, F)
    F_pad = ((F + LANE - 1) // LANE) * LANE
    if F_pad != F:
        x2d = jnp.pad(x2d, ((0, 0), (0, F_pad - F)))
    R = F_pad // LANE
    x3d = x2d.reshape(B, R, LANE)

    itemsize = jnp.dtype(x3d.dtype).itemsize
    row_bytes = F_pad * itemsize

    vmem = _vmem_capacity_bytes()
    target_block_bytes = min(4 << 20, vmem // 16)        # ~4 MiB, scaled to chip VMEM
    vmem_limit = int(min(96 << 20, (vmem * 3) // 4))     # raise the scoped default

    b_tile = 1 if force_row_gather else _choose_b_tile(B, row_bytes, target_block_bytes)

    lamb_arr = jnp.asarray(lamb, jnp.float32).reshape(1)
    permut_i32 = jnp.asarray(permut, jnp.int32)

    if b_tile == 1:
        # Auto-pipelined gather via the index_map: strictly better whenever the permuted
        # block is one rectangular tile (single row).  Batch axis is megacore-parallel.
        grid_spec = pltpu.PrefetchScalarGridSpec(
            num_scalar_prefetch=1,                                            # permut -> SMEM
            grid=(B,),
            in_specs=[
                pl.BlockSpec(memory_space=pltpu.MemorySpace.SMEM),            # lamb
                pl.BlockSpec((1, R, LANE), lambda b, permut: (b, 0, 0)),      # x[b]
                pl.BlockSpec((1, R, LANE), lambda b, permut: (permut[b], 0, 0)),  # x[permut[b]]
            ],
            out_specs=pl.BlockSpec((1, R, LANE), lambda b, permut: (b, 0, 0)),
        )
        kernel = _mixup_rowgather_kernel
        dim_sem = ("parallel",)
    else:
        # Multi-row blocks + double-buffered manual gather.  DMA state is carried across
        # grid iterations, so this axis must be "arbitrary" (sequential); measured-neutral
        # on single-TC v5e/v6e.
        grid_spec = pltpu.PrefetchScalarGridSpec(
            num_scalar_prefetch=1,
            grid=(B // b_tile,),
            in_specs=[
                pl.BlockSpec(memory_space=pltpu.MemorySpace.SMEM),            # lamb
                pl.BlockSpec((b_tile, R, LANE), lambda i, permut: (i, 0, 0)), # identity rows
                pl.BlockSpec(memory_space=pl.ANY),                            # x in HBM (gather)
            ],
            out_specs=pl.BlockSpec((b_tile, R, LANE), lambda i, permut: (i, 0, 0)),
            scratch_shapes=[
                pltpu.VMEM((2, b_tile, R, LANE), x3d.dtype),                  # gather dbl-buf
                pltpu.SemaphoreType.DMA((2, b_tile)),
            ],
        )
        kernel = functools.partial(_mixup_tiled_kernel, b_tile)
        dim_sem = ("arbitrary",)

    out = pl.pallas_call(
        kernel,
        out_shape=jax.ShapeDtypeStruct((B, R, LANE), x3d.dtype),
        grid_spec=grid_spec,
        compiler_params=pltpu.CompilerParams(
            dimension_semantics=dim_sem,
            vmem_limit_bytes=vmem_limit,
        ),
        interpret=interpret,
    )(permut_i32, lamb_arr, x3d, x3d)

    out = out.reshape(B, F_pad)[:, :F]
    return out.reshape(x.shape)


def mixup_forward(x, lamb, permut, *, training=True, enable=True):
    """Mirror Mixup.forward: mix only when training and the module is enabled."""
    # TODO(synk): the stateful parts of the PyTorch module (self.training / self.enable,
    # np.random.beta sampling, torch.randperm) are host-side control flow, handled in the
    # wrapper / demo rather than inside the kernel.
    if training and enable:
        return mixup_apply(x, lamb, permut)
    return x


def mixup_ref(x, lamb, permut):
    """Pure-JAX reference mirroring the PyTorch forward (train/enabled path)."""
    lamb = jnp.asarray(lamb, jnp.float32)
    return (lamb * x + (1.0 - lamb) * x[permut]).astype(x.dtype)


if __name__ == "__main__":
    B, C, H, W = 2, 4, 16, 16
    beta = 1.0

    key = jax.random.PRNGKey(0)
    kx, kl, kp = jax.random.split(key, 3)

    x = jax.random.normal(kx, (B, C, H, W), dtype=jnp.float32)
    # Mixup.sample(): lamb ~ Beta(beta, beta), permut = randperm(B)  (host-side RNG).
    lamb = jax.random.beta(kl, beta, beta)
    permut = jax.random.permutation(kp, B)

    ref = mixup_ref(x, lamb, permut)

    # Default path (multi-row block + double-buffered gather for this shape).
    out = mixup_forward(x, lamb, permut, training=True, enable=True)
    out = jax.block_until_ready(out)
    assert out.shape == (B, C, H, W)
    assert jnp.allclose(out, ref, atol=1e-6, rtol=1e-6), "tiled-path mismatch vs reference"

    # Also exercise the per-row auto-pipelined (index_map gather) path.
    out_row = jax.block_until_ready(mixup_apply(x, lamb, permut, force_row_gather=True))
    assert jnp.allclose(out_row, ref, atol=1e-6, rtol=1e-6), "row-path mismatch vs reference"

    # Eval / disabled path must be identity (matches the PyTorch else-branch).
    out_eval = mixup_forward(x, lamb, permut, training=False, enable=True)
    assert jnp.array_equal(out_eval, x)

    print("KERNEL_OK")
</pallas_src>

<mosaic_0001>
module attributes {stable_mosaic.version = 11 : i64} {
  func.func @_mixup_tiled_kernel(%arg0: i32, %arg1: memref<2xi32, #tpu.memory_space<smem>>, %arg2: memref<1xf32, #tpu.memory_space<smem>>, %arg3: memref<2x8x128xf32, #tpu.memory_space<vmem>>, %arg4: memref<2x8x128xf32, #tpu.memory_space<any>>, %arg5: memref<2x8x128xf32, #tpu.memory_space<vmem>>, %arg6: memref<2x2x8x128xf32, #tpu.memory_space<vmem>>, %arg7: memref<2x2x!tpu.dma_semaphore, #tpu.memory_space<semaphore_mem>>) attributes {dimension_semantics = [#tpu.dimension_semantics<arbitrary>], iteration_bounds = array<i64: 1>, scalar_prefetch = 1 : i64, scratch_operands = 2 : i64, tpu.core_type = #tpu.core_type<tc>, window_params = [{transform_indices = @transform_0, window_bounds = array<i64: 1>}, {transform_indices = @transform_1, window_bounds = array<i64: 2, 8, 128>}, {}, {transform_indices = @transform_3, window_bounds = array<i64: 2, 8, 128>}]} {
    %c1_i32 = arith.constant 1 : i32
    %0 = arith.andi %arg0, %c1_i32 : i32
    %c1_i32_0 = arith.constant 1 : i32
    %1 = arith.subi %c1_i32_0, %0 : i32
    %c2_i32 = arith.constant 2 : i32
    %2 = arith.muli %arg0, %c2_i32 : i32
    %c0 = arith.constant 0 : index
    %3 = memref.load %arg2[%c0] : memref<1xf32, #tpu.memory_space<smem>>
    %c0_i32 = arith.constant 0 : i32
    %4 = arith.addi %2, %c0_i32 : i32
    %5 = arith.index_cast %4 : i32 to index
    %6 = memref.load %arg1[%5] : memref<2xi32, #tpu.memory_space<smem>>
    %c1_i32_1 = arith.constant 1 : i32
    %7 = arith.addi %2, %c1_i32_1 : i32
    %8 = arith.index_cast %7 : i32 to index
    %9 = memref.load %arg1[%8] : memref<2xi32, #tpu.memory_space<smem>>
    %c0_i32_2 = arith.constant 0 : i32
    %10 = arith.cmpi eq, %arg0, %c0_i32_2 : i32
    %11 = arith.extui %10 : i1 to i32
    %c0_i32_3 = arith.constant 0 : i32
    %12 = arith.cmpi ne, %11, %c0_i32_3 : i32
    scf.if %12 {
      %c0_i32_28 = arith.constant 0 : i32
      %c0_i32_29 = arith.constant 0 : i32
      %c0_i32_30 = arith.constant 0 : i32
      %c0_i32_31 = arith.constant 0 : i32
      %40 = tpu.memref_slice %arg4[%6, %c0_i32_30, %c0_i32_31] : memref<2x8x128xf32, #tpu.memory_space<any>> -> memref<1x8x128xf32, #tpu.memory_space<any>>
      %41 = tpu.memref_squeeze %40 : memref<1x8x128xf32, #tpu.memory_space<any>> -> memref<8x128xf32, #tpu.memory_space<any>>
      %c0_i32_32 = arith.constant 0 : i32
      %c0_i32_33 = arith.constant 0 : i32
      %42 = tpu.memref_slice %arg6[%0, %c0_i32_28, %c0_i32_32, %c0_i32_33] : memref<2x2x8x128xf32, #tpu.memory_space<vmem>> -> memref<1x1x8x128xf32, #tpu.memory_space<vmem>>
      %43 = tpu.memref_squeeze %42 : memref<1x1x8x128xf32, #tpu.memory_space<vmem>> -> memref<8x128xf32, #tpu.memory_space<vmem>>
      %44 = tpu.memref_slice %arg7[%0, %c0_i32_29] : memref<2x2x!tpu.dma_semaphore, #tpu.memory_space<semaphore_mem>> -> memref<1x1x!tpu.dma_semaphore, #tpu.memory_space<semaphore_mem>>
      %45 = tpu.memref_squeeze %44 : memref<1x1x!tpu.dma_semaphore, #tpu.memory_space<semaphore_mem>> -> memref<!tpu.dma_semaphore, #tpu.memory_space<semaphore_mem>>
      tpu.enqueue_dma source(%41 : memref<8x128xf32, #tpu.memory_space<any>>) target(%43 : memref<8x128xf32, #tpu.memory_space<vmem>>) target_semaphore(%45 : memref<!tpu.dma_semaphore, #tpu.memory_space<semaphore_mem>>)
      %c1_i32_34 = arith.constant 1 : i32
      %c1_i32_35 = arith.constant 1 : i32
      %c0_i32_36 = arith.constant 0 : i32
      %c0_i32_37 = arith.constant 0 : i32
      %46 = tpu.memref_slice %arg4[%9, %c0_i32_36, %c0_i32_37] : memref<2x8x128xf32, #tpu.memory_space<any>> -> memref<1x8x128xf32, #tpu.memory_space<any>>
      %47 = tpu.memref_squeeze %46 : memref<1x8x128xf32, #tpu.memory_space<any>> -> memref<8x128xf32, #tpu.memory_space<any>>
      %c0_i32_38 = arith.constant 0 : i32
      %c0_i32_39 = arith.constant 0 : i32
      %48 = tpu.memref_slice %arg6[%0, %c1_i32_34, %c0_i32_38, %c0_i32_39] : memref<2x2x8x128xf32, #tpu.memory_space<vmem>> -> memref<1x1x8x128xf32, #tpu.memory_space<vmem>>
      %49 = tpu.memref_squeeze %48 : memref<1x1x8x128xf32, #tpu.memory_space<vmem>> -> memref<8x128xf32, #tpu.memory_space<vmem>>
      %50 = tpu.memref_slice %arg7[%0, %c1_i32_35] : memref<2x2x!tpu.dma_semaphore, #tpu.memory_space<semaphore_mem>> -> memref<1x1x!tpu.dma_semaphore, #tpu.memory_space<semaphore_mem>>
      %51 = tpu.memref_squeeze %50 : memref<1x1x!tpu.dma_semaphore, #tpu.memory_space<semaphore_mem>> -> memref<!tpu.dma_semaphore, #tpu.memory_space<semaphore_mem>>
      tpu.enqueue_dma source(%47 : memref<8x128xf32, #tpu.memory_space<any>>) target(%49 : memref<8x128xf32, #tpu.memory_space<vmem>>) target_semaphore(%51 : memref<!tpu.dma_semaphore, #tpu.memory_space<semaphore_mem>>)
    } else {
    }
    %c1_i32_4 = arith.constant 1 : i32
    %13 = arith.addi %arg0, %c1_i32_4 : i32
    %c1_i32_5 = arith.constant 1 : i32
    %14 = arith.cmpi slt, %13, %c1_i32_5 : i32
    %15 = arith.extui %14 : i1 to i32
    %c0_i32_6 = arith.constant 0 : i32
    %16 = arith.cmpi ne, %15, %c0_i32_6 : i32
    scf.if %16 {
      %c1_i32_28 = arith.constant 1 : i32
      %40 = arith.addi %arg0, %c1_i32_28 : i32
      %c2_i32_29 = arith.constant 2 : i32
      %41 = arith.muli %40, %c2_i32_29 : i32
      %c0_i32_30 = arith.constant 0 : i32
      %42 = arith.addi %41, %c0_i32_30 : i32
      %43 = arith.index_cast %42 : i32 to index
      %44 = memref.load %arg1[%43] : memref<2xi32, #tpu.memory_space<smem>>
      %c0_i32_31 = arith.constant 0 : i32
      %c0_i32_32 = arith.constant 0 : i32
      %c0_i32_33 = arith.constant 0 : i32
      %c0_i32_34 = arith.constant 0 : i32
      %45 = tpu.memref_slice %arg4[%44, %c0_i32_33, %c0_i32_34] : memref<2x8x128xf32, #tpu.memory_space<any>> -> memref<1x8x128xf32, #tpu.memory_space<any>>
      %46 = tpu.memref_squeeze %45 : memref<1x8x128xf32, #tpu.memory_space<any>> -> memref<8x128xf32, #tpu.memory_space<any>>
      %c0_i32_35 = arith.constant 0 : i32
      %c0_i32_36 = arith.constant 0 : i32
      %47 = tpu.memref_slice %arg6[%1, %c0_i32_31, %c0_i32_35, %c0_i32_36] : memref<2x2x8x128xf32, #tpu.memory_space<vmem>> -> memref<1x1x8x128xf32, #tpu.memory_space<vmem>>
      %48 = tpu.memref_squeeze %47 : memref<1x1x8x128xf32, #tpu.memory_space<vmem>> -> memref<8x128xf32, #tpu.memory_space<vmem>>
      %49 = tpu.memref_slice %arg7[%1, %c0_i32_32] : memref<2x2x!tpu.dma_semaphore, #tpu.memory_space<semaphore_mem>> -> memref<1x1x!tpu.dma_semaphore, #tpu.memory_space<semaphore_mem>>
      %50 = tpu.memref_squeeze %49 : memref<1x1x!tpu.dma_semaphore, #tpu.memory_space<semaphore_mem>> -> memref<!tpu.dma_semaphore, #tpu.memory_space<semaphore_mem>>
      tpu.enqueue_dma source(%46 : memref<8x128xf32, #tpu.memory_space<any>>) target(%48 : memref<8x128xf32, #tpu.memory_space<vmem>>) target_semaphore(%50 : memref<!tpu.dma_semaphore, #tpu.memory_space<semaphore_mem>>)
      %c1_i32_37 = arith.constant 1 : i32
      %51 = arith.addi %41, %c1_i32_37 : i32
      %52 = arith.index_cast %51 : i32 to index
      %53 = memref.load %arg1[%52] : memref<2xi32, #tpu.memory_space<smem>>
      %c1_i32_38 = arith.constant 1 : i32
      %c1_i32_39 = arith.constant 1 : i32
      %c0_i32_40 = arith.constant 0 : i32
      %c0_i32_41 = arith.constant 0 : i32
      %54 = tpu.memref_slice %arg4[%53, %c0_i32_40, %c0_i32_41] : memref<2x8x128xf32, #tpu.memory_space<any>> -> memref<1x8x128xf32, #tpu.memory_space<any>>
      %55 = tpu.memref_squeeze %54 : memref<1x8x128xf32, #tpu.memory_space<any>> -> memref<8x128xf32, #tpu.memory_space<any>>
      %c0_i32_42 = arith.constant 0 : i32
      %c0_i32_43 = arith.constant 0 : i32
      %56 = tpu.memref_slice %arg6[%1, %c1_i32_38, %c0_i32_42, %c0_i32_43] : memref<2x2x8x128xf32, #tpu.memory_space<vmem>> -> memref<1x1x8x128xf32, #tpu.memory_space<vmem>>
      %57 = tpu.memref_squeeze %56 : memref<1x1x8x128xf32, #tpu.memory_space<vmem>> -> memref<8x128xf32, #tpu.memory_space<vmem>>
      %58 = tpu.memref_slice %arg7[%1, %c1_i32_39] : memref<2x2x!tpu.dma_semaphore, #tpu.memory_space<semaphore_mem>> -> memref<1x1x!tpu.dma_semaphore, #tpu.memory_space<semaphore_mem>>
      %59 = tpu.memref_squeeze %58 : memref<1x1x!tpu.dma_semaphore, #tpu.memory_space<semaphore_mem>> -> memref<!tpu.dma_semaphore, #tpu.memory_space<semaphore_mem>>
      tpu.enqueue_dma source(%55 : memref<8x128xf32, #tpu.memory_space<any>>) target(%57 : memref<8x128xf32, #tpu.memory_space<vmem>>) target_semaphore(%59 : memref<!tpu.dma_semaphore, #tpu.memory_space<semaphore_mem>>)
    } else {
    }
    %c0_i32_7 = arith.constant 0 : i32
    %c0_i32_8 = arith.constant 0 : i32
    %c0_i32_9 = arith.constant 0 : i32
    %c0_i32_10 = arith.constant 0 : i32
    %17 = tpu.memref_slice %arg4[%6, %c0_i32_9, %c0_i32_10] : memref<2x8x128xf32, #tpu.memory_space<any>> -> memref<1x8x128xf32, #tpu.memory_space<any>>
    %18 = tpu.memref_squeeze %17 : memref<1x8x128xf32, #tpu.memory_space<any>> -> memref<8x128xf32, #tpu.memory_space<any>>
    %c0_i32_11 = arith.constant 0 : i32
    %c0_i32_12 = arith.constant 0 : i32
    %19 = tpu.memref_slice %arg6[%0, %c0_i32_7, %c0_i32_11, %c0_i32_12] : memref<2x2x8x128xf32, #tpu.memory_space<vmem>> -> memref<1x1x8x128xf32, #tpu.memory_space<vmem>>
    %20 = tpu.memref_squeeze %19 : memref<1x1x8x128xf32, #tpu.memory_space<vmem>> -> memref<8x128xf32, #tpu.memory_space<vmem>>
    %21 = tpu.memref_slice %arg7[%0, %c0_i32_8] : memref<2x2x!tpu.dma_semaphore, #tpu.memory_space<semaphore_mem>> -> memref<1x1x!tpu.dma_semaphore, #tpu.memory_space<semaphore_mem>>
    %22 = tpu.memref_squeeze %21 : memref<1x1x!tpu.dma_semaphore, #tpu.memory_space<semaphore_mem>> -> memref<!tpu.dma_semaphore, #tpu.memory_space<semaphore_mem>>
    tpu.wait_dma2 semaphore(%22 : memref<!tpu.dma_semaphore, #tpu.memory_space<semaphore_mem>>) src(%18 : memref<8x128xf32, #tpu.memory_space<any>>) dst(%20 : memref<8x128xf32, #tpu.memory_space<vmem>>)
    %c1_i32_13 = arith.constant 1 : i32
    %c1_i32_14 = arith.constant 1 : i32
    %c0_i32_15 = arith.constant 0 : i32
    %c0_i32_16 = arith.constant 0 : i32
    %23 = tpu.memref_slice %arg4[%9, %c0_i32_15, %c0_i32_16] : memref<2x8x128xf32, #tpu.memory_space<any>> -> memref<1x8x128xf32, #tpu.memory_space<any>>
    %24 = tpu.memref_squeeze %23 : memref<1x8x128xf32, #tpu.memory_space<any>> -> memref<8x128xf32, #tpu.memory_space<any>>
    %c0_i32_17 = arith.constant 0 : i32
    %c0_i32_18 = arith.constant 0 : i32
    %25 = tpu.memref_slice %arg6[%0, %c1_i32_13, %c0_i32_17, %c0_i32_18] : memref<2x2x8x128xf32, #tpu.memory_space<vmem>> -> memref<1x1x8x128xf32, #tpu.memory_space<vmem>>
    %26 = tpu.memref_squeeze %25 : memref<1x1x8x128xf32, #tpu.memory_space<vmem>> -> memref<8x128xf32, #tpu.memory_space<vmem>>
    %27 = tpu.memref_slice %arg7[%0, %c1_i32_14] : memref<2x2x!tpu.dma_semaphore, #tpu.memory_space<semaphore_mem>> -> memref<1x1x!tpu.dma_semaphore, #tpu.memory_space<semaphore_mem>>
    %28 = tpu.memref_squeeze %27 : memref<1x1x!tpu.dma_semaphore, #tpu.memory_space<semaphore_mem>> -> memref<!tpu.dma_semaphore, #tpu.memory_space<semaphore_mem>>
    tpu.wait_dma2 semaphore(%28 : memref<!tpu.dma_semaphore, #tpu.memory_space<semaphore_mem>>) src(%24 : memref<8x128xf32, #tpu.memory_space<any>>) dst(%26 : memref<8x128xf32, #tpu.memory_space<vmem>>)
    %c0_19 = arith.constant 0 : index
    %c0_20 = arith.constant 0 : index
    %c0_21 = arith.constant 0 : index
    %29 = vector.load %arg3[%c0_19, %c0_20, %c0_21] : memref<2x8x128xf32, #tpu.memory_space<vmem>>, vector<2x8x128xf32>
    %30 = vector.broadcast %3 : f32 to vector<2x8x128xf32>
    %31 = arith.mulf %30, %29 : vector<2x8x128xf32>
    %cst = arith.constant 1.000000e+00 : f32
    %32 = arith.subf %cst, %3 : f32
    %33 = arith.index_cast %0 : i32 to index
    %c0_22 = arith.constant 0 : index
    %c0_23 = arith.constant 0 : index
    %c0_24 = arith.constant 0 : index
    %34 = vector.load %arg6[%33, %c0_22, %c0_23, %c0_24] : memref<2x2x8x128xf32, #tpu.memory_space<vmem>>, vector<1x2x8x128xf32>
    %35 = vector.shape_cast %34 : vector<1x2x8x128xf32> to vector<2x8x128xf32>
    %36 = vector.broadcast %32 : f32 to vector<2x8x128xf32>
    %37 = arith.mulf %36, %35 : vector<2x8x128xf32>
    %38 = arith.addf %31, %37 : vector<2x8x128xf32>
    %c0_25 = arith.constant 0 : index
    %c0_26 = arith.constant 0 : index
    %c0_27 = arith.constant 0 : index
    %39 = vector.load %arg5[%c0_25, %c0_26, %c0_27] : memref<2x8x128xf32, #tpu.memory_space<vmem>>, vector<2x8x128xf32>
    tpu.vector_store %arg5[%c0_25, %c0_26, %c0_27], %38 {strides = array<i32>} : memref<2x8x128xf32, #tpu.memory_space<vmem>>, vector<2x8x128xf32>,
    return
  }
  func.func @transform_0(%arg0: i32, %arg1: memref<2xi32, #tpu.memory_space<smem>>) -> i32 {
    %c0_i32 = arith.constant 0 : i32
    %c0_i32_0 = arith.constant 0 : i32
    return %c0_i32 : i32
  }
  func.func @transform_1(%arg0: i32, %arg1: memref<2xi32, #tpu.memory_space<smem>>) -> (i32, i32, i32) {
    %c0_i32 = arith.constant 0 : i32
    %c0_i32_0 = arith.constant 0 : i32
    %c0_i32_1 = arith.constant 0 : i32
    return %arg0, %c0_i32, %c0_i32_0 : i32, i32, i32
  }
  func.func @transform_3(%arg0: i32, %arg1: memref<2xi32, #tpu.memory_space<smem>>) -> (i32, i32, i32) {
    %c0_i32 = arith.constant 0 : i32
    %c0_i32_0 = arith.constant 0 : i32
    %c0_i32_1 = arith.constant 0 : i32
    return %arg0, %c0_i32, %c0_i32_0 : i32, i32, i32
  }
}

</mosaic_0001>

<bundles_post_ra>
// kernel: tpu_custom_call.1
= control target key start
LH: loop header
LB: loop body
LE: loop exit
PB: predicated region body
PF: predicated region fallthrough
CT: control target
= control target key end

     0   :  { %s453_s0 = inlined_call_operand.vmem [shape: s32[2], index: 0, kind: input, shape index: {}]   ;;  %s454_s1 = inlined_call_operand.<no memory space> [shape: f32[1], index: 1, kind: input, shape index: {}]   ;;  %s455_s2 = inlined_call_operand.hbm [shape: f32[2,8,128], index: 2, kind: input, shape index: {}]   ;;  %s456_s3 = inlined_call_operand.hbm [shape: f32[2,8,128], index: 3, kind: input, shape index: {}]   ;;  %s457_s4 = inlined_call_operand.hbm [shape: f32[2,8,128], index: 4, kind: output, shape index: {}]  }
   0x1   :  { %s9_s17 = sshll.u32 %s453_s0, 4  ;;  %s10_s17 = int_to_ptr.vmem [resolvable:$true] %s9_s17 }
   0x2   :  { %s258_s18 = scalar_lea.vmem %s10_s17, 16  ;;  %p263_p1 = scmp.lt.s32.totalorder %s10_s17, %s10_s17 }
   0x3   :  { %p259_p0 = scmp.ne.s32.totalorder %s10_s17, %s258_s18  ;;  %p264_p2 = scmp.lt.s32.totalorder %s258_s18, %s258_s18 }
   0x5   :  { %p265_p3 = por %p264_p2, %p263_p1 }
   0x7   :  { %p266_p4 = pnand %p265_p3, %p259_p0 }
   0x9   :  { %269 = shalt.err (!%p266_p4)  }
   0xa   :  { %s364_s19 = smov [#allocation5]  }
   0xb   :  { %12 = dma.vmem_to_smem %s10_s17, 16, %s364_s19, [#allocation4] }
   0xc   :  { %354 = dma.done.wait [#allocation4], 16 }
   0xd   :  { %355 = vsyncadd [#allocation4], 4294967280 }
   0xe   :  { %15 = sfence }
   0xf   :  { %16 = vsyncpa [#allocation8], 0 }
  0x10   :  { %17 = vsyncpa [#allocation9], 0  ;;  %s365_s20 = smov [#allocation7]  }
  0x11   :  { %s25_s21 = sshll.u32 %s365_s20, 4  ;;  %s26_s21 = int_to_ptr.vmem [resolvable:$true] %s25_s21 }
  0x12   :  { %s278_s22 = scalar_lea.vmem %s26_s21, 256  ;;  %p283_p6 = scmp.lt.s32.totalorder %s26_s21, %s26_s21 }
  0x13   :  { %p279_p5 = scmp.ne.s32.totalorder %s26_s21, %s278_s22  ;;  %p284_p7 = scmp.lt.s32.totalorder %s278_s22, %s278_s22 }
  0x15   :  { %p285_p8 = por %p284_p7, %p283_p6 }
  0x17   :  { %p286_p9 = pnand %p285_p8, %p279_p5 }
  0x19   :  { %289 = shalt.err (!%p286_p9)
}
  0x1a   :  { %s366_s0 = smov 128   ;;  %s367_s23 = smov 8  }
  0x1b   :  { %31 = dma.hbm_to_vmem [thread:$0]  %s455_s2, 256, %s26_s21, [#allocation8], %s366_s0, %s366_s0, %s367_s23  }
  0x1c   :  { %356 = dma.done.wait [#allocation8], 256  }
  0x1d   :  { %357 = vsyncadd [#allocation8], 4294967040  ;;  %s232_s26 = sld [smem:[#allocation5 + $0x1]]  ;;  %s368_s28 = smov [#allocation2]  }
  0x1e   :  { %s39_s27 = sld [smem:[#allocation5]]  ;;  %s60_s29 = sshll.u32 %s368_s28, 4  ;;  %s405_s29 = int_to_ptr.vmem [resolvable:$true] %s60_s29 }
  0x1f   :  { %s369_s30 = smov [#allocation2 + $0x8]   ;;  %s292_s16 = scalar_lea.hbm %s456_s3, 256 }
  0x20   :  { %s78_s5 = sshll.u32 %s369_s30, 4  ;;  %s407_s5 = int_to_ptr.vmem [resolvable:$true] %s78_s5 }
  0x23   :  { %s248_s6 = sshll.u32 %s232_s26, 7 }
  0x24   :  { %s247_s7 = sshll.u32 %s39_s27, 7  ;;  %s412_s10 = scalar_lea.hbm %s456_s3, %s248_s6 }
  0x25   :  { %s48_s12 = scalar_lea.hbm %s456_s3, %s247_s7 }
  0x26   :  { %s290_s13 = scalar_lea.hbm %s48_s12, 128  ;;  %p293_p11 = scmp.lt.s32.totalorder %s48_s12, %s456_s3 }
  0x27   :  { %p291_p10 = scmp.ne.s32.totalorder %s48_s12, %s290_s13  ;;  %p294_p12 = scmp.lt.s32.totalorder %s292_s16, %s290_s13 }
  0x29   :  { %p295_p13 = por %p294_p12, %p293_p11 }
  0x2b   :  { %p296_p0 = pnand %p295_p13, %p291_p10 }
  0x2d   :  { %299 = shalt.err (!%p296_p0)  }
  0x2e   :  { %s300_s19 = scalar_lea.vmem %s405_s29, 128  ;;  %s304_s20 = scalar_lea.vmem %s405_s29, 512 }
  0x2f   :  { %p301_p1 = scmp.ne.s32.totalorder %s405_s29, %s300_s19  ;;  %p305_p2 = scmp.lt.s32.totalorder %s405_s29, %s405_s29 }
  0x30   :  { %p306_p3 = scmp.lt.s32.totalorder %s304_s20, %s300_s19 }
  0x32   :  { %p307_p4 = por %p306_p3, %p305_p2 }
  0x34   :  { %p308_p5 = pnand %p307_p4, %p301_p1 }
  0x36   :  { %311 = shalt.err (!%p308_p5)  }
  0x37   :  { %63 = dma.hbm_to_vmem [thread:$0]  %s48_s12, 128, %s405_s29, [#allocation3] }
  0x38   :  { %s312_s21 = scalar_lea.hbm %s412_s10, 128  ;;  %p315_p7 = scmp.lt.s32.totalorder %s412_s10, %s456_s3 }
  0x39   :  { %p313_p6 = scmp.ne.s32.totalorder %s412_s10, %s312_s21  ;;  %p316_p8 = scmp.lt.s32.totalorder %s292_s16, %s312_s21 }
  0x3b   :  { %p317_p9 = por %p316_p8, %p315_p7 }
  0x3d   :  { %p318_p10 = pnand %p317_p9, %p313_p6 }
  0x3f   :  { %321 = shalt.err (!%p318_p10)  }
  0x40   :  { %s322_s25 = scalar_lea.vmem %s407_s5, 128  ;;  %p327_p12 = scmp.lt.s32.totalorder %s407_s5, %s405_s29 }
  0x41   :  { %p323_p11 = scmp.ne.s32.totalorder %s407_s5, %s322_s25  ;;  %p328_p13 = scmp.lt.s32.totalorder %s304_s20, %s322_s25 }
  0x43   :  { %p329_p0 = por %p328_p13, %p327_p12 }
  0x45   :  { %p330_p1 = pnand %p329_p0, %p323_p11 }
  0x47   :  { %333 = shalt.err (!%p330_p1)  }
  0x48   :  { %81 = dma.hbm_to_vmem [thread:$0]  %s412_s10, 128, %s407_s5, [#allocation3 + $0x1] }
  0x49   :  { %358 = dma.done.wait [#allocation3], 128 }
  0x4a   :  { %359 = vsyncadd [#allocation3], 4294967168 }
  0x4b   :  { %360 = dma.done.wait [#allocation3 + $0x1], 128 }
  0x4c   :  { %361 = vsyncadd [#allocation3 + $0x1], 4294967168  ;;  %s141_s27 = ssub.f32 1.0, %s454_s1  ;;  %v138_v0 = vstv %s454_s1  ;;  %v136_v2 = vld [vmem:[#allocation7] sm:$0xff]  ;;  %v137_v4 = vld [vmem:[#allocation7 + $0x8] sm:$0xff]  ;;  %s370_s29 = smov [#allocation10]  }
  0x4d   :  { %v144_v3 = vld [vmem:[#allocation2] sm:$0xff]  ;;  %v139_v5 = vmul.f32 %v138_v0, %v136_v2  ;;  %v140_v7 = vmul.f32 %v138_v0, %v137_v4  ;;  %v145_v8 = vld [vmem:[#allocation2 + $0x8] sm:$0xff]  ;;  %s158_s5 = sshll.u32 %s370_s29, 4  ;;  %s159_s5 = int_to_ptr.vmem [resolvable:$true] %s158_s5 }
  0x4e   :  { %v146_v1 = vstv %s141_s27  ;;  %s334_s6 = scalar_lea.vmem %s159_s5, 256  ;;  %p339_p3 = scmp.lt.s32.totalorder %s159_s5, %s159_s5 }
  0x4f   :  { %v147_v6 = vmul.f32 %v146_v1, %v144_v3  ;;  %v148_v9 = vmul.f32 %v146_v1, %v145_v8  ;;  %p335_p2 = scmp.ne.s32.totalorder %s159_s5, %s334_s6  ;;  %p340_p4 = scmp.lt.s32.totalorder %s334_s6, %s334_s6 }
  0x51   :  { %v149_v10 = vadd.f32 %v147_v6, %v139_v5  ;;  %v150_v11 = vadd.f32 %v148_v9, %v140_v7  ;;  %p341_p5 = por %p340_p4, %p339_p3 }
  0x53   :  { %151 = vst [vmem:[#allocation10] sm:$0xff] %v149_v10  ;;  %152 = vst [vmem:[#allocation10 + $0x8] sm:$0xff] %v150_v11  ;;  %p342_p6 = pnand %p341_p5, %p335_p2 }
  0x55   :  { %345 = shalt.err (!%p342_p6)
}
  0x56   :  { %164 = dma.vmem_to_hbm [thread:$0]  %s159_s5, 256, %s457_s4, [#allocation9], %s366_s0, %s366_s0, %s367_s23  }
  0x57   :  { %362 = dma.done.wait [#allocation9], 256  }
  0x58   :  { %363 = vsyncadd [#allocation9], 4294967040 }
  0x59   :  { %168 = vsyncpa [#allocation8], 1 }
  0x5a   :  { %169 = vsyncpa [#allocation9], 1 }
  0x5b   :  { %170 = vsyncmov [#allocation3] }
  0x5e   :  { %s171_s8 = vpop.sfrf %170 }
  0x5f   :  { %p243_p7 = scmp.ne.s32.totalorder %s171_s8, 0 }
  0x61   :  { %175 = shalt.err (%p243_p7)  }
  0x62   :  { %177 = vsyncmov [#allocation3 + $0x1] }
  0x65   :  { %s178_s9 = vpop.sfrf %177 }
  0x66   :  { %p244_p8 = scmp.ne.s32.totalorder %s178_s9, 0 }
  0x68   :  { %182 = shalt.err (%p244_p8)  }
  0x69   :  { %184 = vsyncmov [#allocation3 + $0x2] }
  0x6c   :  { %s185_s10 = vpop.sfrf %184 }
  0x6d   :  { %p245_p9 = scmp.ne.s32.totalorder %s185_s10, 0 }
  0x6f   :  { %189 = shalt.err (%p245_p9)  }
  0x70   :  { %191 = vsyncmov [#allocation3 + $0x3] }
  0x73   :  { %s192_s2 = vpop.sfrf %191 }
  0x74   :  { %p246_p10 = scmp.ne.s32.totalorder %s192_s2, 0 }
  0x76   :  { %196 = shalt.err (%p246_p10)  }

</bundles_post_ra>
